<compile_context>
chip_gen: v7x
topology: tpu7x:2x2x1
jax: 0.10.0
libtpu: 0.0.40
codegen_flags: <defaults>
</compile_context>

<pallas_src>
import functools

import jax
import jax.numpy as jnp
from jax.experimental import pallas as pl
from jax.experimental.pallas import tpu as pltpu

BN_EPS = 1e-5
LANE = 128
TM_TARGET = 1024          # row-tile target (bytes scale: tm*tk int8 adj tile)
TK_TARGET = 4096          # reduction-tile target -> 2-4 MB adjacency DMAs
X_RESIDENT_BYTES = 8 * 1024 * 1024   # keep x fully VMEM-resident below this (incl. 2x buf)
VMEM_LIMIT = 40 * 1024 * 1024        # fits v7x's 64 MiB with headroom; fine on v5e/v6e


def _round_up(v, m):
    return ((v + m - 1) // m) * m


def _largest_divisor_leq(m, cap):
    cap = max(1, min(m, cap))
    for d in range(cap, 0, -1):
        if m % d == 0:
            return d
    return 1


def _pick_tiles(n_pad):
    """tm, tk as multiple-of-128 divisors of n_pad (no tile-multiple N padding)."""
    m_blocks = n_pad // LANE
    tm_cap = TM_TARGET // LANE
    if m_blocks >= 2:
        tm_cap = min(tm_cap, m_blocks // 2)   # >=2 row tiles -> v7x megacore shards
    else:
        tm_cap = 1
    tm_blocks = _largest_divisor_leq(m_blocks, tm_cap)
    tk_blocks = _largest_divisor_leq(m_blocks, TK_TARGET // LANE)
    return tm_blocks * LANE, tk_blocks * LANE


# ---------------------------------------------------------------------------
# Kernel 1: one GIN layer, tiled over (row tile i, reduction tile k)
#   acc[i]  += bf16(adj_int8[i, k]) @ x[k]     (bf16 MXU, f32 accumulate)
#   on last k:
#     z   = relu( acc @ W1' + b1' )            (BN folded into W1', b1')
#     out = relu( z   @ W2  + b2  )  -> bf16   (trailing .relu() of forward())
# ---------------------------------------------------------------------------
def gin_layer_kernel(adj_ref, x_ref, w1_ref, b1_ref, w2_ref, b2_ref,
                     o_ref, acc_ref, *, tk, x_resident):
    k = pl.program_id(1)

    @pl.when(k == 0)
    def _():
        acc_ref[...] = jnp.zeros_like(acc_ref)

    adj = adj_ref[...].astype(jnp.bfloat16)   # int8 -> bf16 upcast (VPU, hidden under DMA)
    if x_resident:
        start = pl.multiple_of(k * tk, tk)
        xk = x_ref[pl.ds(start, tk), :]
    else:
        xk = x_ref[...]
    acc_ref[...] += jnp.dot(adj, xk, preferred_element_type=jnp.float32)

    @pl.when(k == pl.num_programs(1) - 1)
    def _():
        h = acc_ref[...]
        z = jnp.dot(h.astype(jnp.bfloat16), w1_ref[...],
                    preferred_element_type=jnp.float32) + b1_ref[...]
        z = jnp.maximum(z, 0.0)
        z = jnp.dot(z.astype(jnp.bfloat16), w2_ref[...],
                    preferred_element_type=jnp.float32) + b2_ref[...]
        o_ref[...] = jnp.maximum(z, 0.0).astype(o_ref.dtype)


def gin_layer(adj_i8, x_bf16, layer, *, tm, tk):
    n_pad = adj_i8.shape[0]
    f_pad = x_bf16.shape[1]
    h_pad = layer["w2"].shape[1]

    # Keep x fully VMEM-resident (fetched once, sliced in-kernel) when it fits;
    # otherwise stream a (tk, f_pad) tile per reduction step.
    x_resident = (2 * n_pad * f_pad * 2) <= X_RESIDENT_BYTES
    if x_resident:
        x_spec = pl.BlockSpec((n_pad, f_pad), lambda i, k: (0, 0))
    else:
        x_spec = pl.BlockSpec((tk, f_pad), lambda i, k: (k, 0))

    grid = (n_pad // tm, n_pad // tk)
    kernel = functools.partial(gin_layer_kernel, tk=tk, x_resident=x_resident)
    return pl.pallas_call(
        kernel,
        out_shape=jax.ShapeDtypeStruct((n_pad, h_pad), jnp.bfloat16),
        grid=grid,
        in_specs=[
            pl.BlockSpec((tm, tk), lambda i, k: (i, k)),        # adjacency tile (int8)
            x_spec,                                             # x (resident or streamed)
            pl.BlockSpec((f_pad, h_pad), lambda i, k: (0, 0)),  # W1 (BN folded)
            pl.BlockSpec((1, h_pad), lambda i, k: (0, 0)),      # b1 (BN folded)
            pl.BlockSpec((h_pad, h_pad), lambda i, k: (0, 0)),  # W2
            pl.BlockSpec((1, h_pad), lambda i, k: (0, 0)),      # b2
        ],
        out_specs=pl.BlockSpec((tm, h_pad), lambda i, k: (i, 0)),
        scratch_shapes=[pltpu.VMEM((tm, f_pad), jnp.float32)],
        compiler_params=pltpu.CompilerParams(
            dimension_semantics=("parallel", "arbitrary"),
            vmem_limit_bytes=VMEM_LIMIT,
        ),
    )(adj_i8, x_bf16, layer["w1"], layer["b1"], layer["w2"], layer["b2"])


# ---------------------------------------------------------------------------
# Kernel 2: edge MLP + global softmax, lane-dense (edges on the lane axis)
#   zT = relu( W1^T @ eT + b1 )                 (E on lanes throughout)
#   sT = sum_h( zT * w2_col ) + b2  -> (1, E)   (VPU mul + sublane reduce, no M=1 MXU)
#   out = softmax over valid edge lanes (padded lanes masked to -inf / 0)
# ---------------------------------------------------------------------------
def _edge_mlp_softmax_kernel(n_edges, eT_ref, w1t_ref, b1t_ref, w2c_ref,
                             b2_ref, o_ref):
    z = jnp.dot(w1t_ref[...], eT_ref[...],
                preferred_element_type=jnp.float32) + b1t_ref[...]
    z = jnp.maximum(z, 0.0)                 # dropout = identity in eval mode
    s = jnp.sum(z * w2c_ref[...], axis=0, keepdims=True) + b2_ref[...]  # (1, E_pad)
    col = jax.lax.broadcasted_iota(jnp.int32, s.shape, 1)
    valid = col < n_edges
    s = jnp.where(valid, s, -jnp.inf)
    m = jnp.max(s, axis=-1, keepdims=True)
    ex = jnp.where(valid, jnp.exp(s - m), 0.0)
    denom = jnp.sum(ex, axis=-1, keepdims=True)
    o_ref[...] = ex / denom                 # exact normalization


def edge_mlp_softmax(eT_bf16, mlp, n_edges):
    e_pad = eT_bf16.shape[1]
    vmem = pl.BlockSpec(memory_space=pltpu.MemorySpace.VMEM)
    kernel = functools.partial(_edge_mlp_softmax_kernel, n_edges)
    return pl.pallas_call(
        kernel,
        out_shape=jax.ShapeDtypeStruct((1, e_pad), jnp.float32),
        in_specs=[vmem] * 5,
        out_specs=vmem,
    )(eT_bf16, mlp["w1t"], mlp["b1t"], mlp["w2c"], mlp["b2"])


# ---------------------------------------------------------------------------
# Parameter init (deterministic, true shapes follow CXModel.__init__)
# ---------------------------------------------------------------------------
def init_params(key, in_dim, hidden, num_layers):
    params = {"convs": []}
    fin = in_dim
    for l in range(num_layers):
        k = jax.random.fold_in(key, l)
        k1, k2 = jax.random.split(k)
        layer = dict(
            w1=jax.random.normal(k1, (fin, hidden), jnp.float32) / jnp.sqrt(fin),
            b1=jnp.zeros((hidden,), jnp.float32),
            gamma=jnp.ones((hidden,), jnp.float32),
            beta=jnp.zeros((hidden,), jnp.float32),
            mean=jnp.zeros((hidden,), jnp.float32),
            var=jnp.ones((hidden,), jnp.float32),
            w2=jax.random.normal(k2, (hidden, hidden), jnp.float32) / jnp.sqrt(hidden),
            b2=jnp.zeros((hidden,), jnp.float32),
        )
        params["convs"].append(layer)
        fin = hidden
    km = jax.random.fold_in(key, 1000)
    km1, km2 = jax.random.split(km)
    params["mlp"] = dict(
        w1=jax.random.normal(km1, (2 * hidden, hidden), jnp.float32) / jnp.sqrt(2 * hidden),
        b1=jnp.zeros((hidden,), jnp.float32),
        w2=jax.random.normal(km2, (hidden, 1), jnp.float32) / jnp.sqrt(hidden),
        b2=jnp.zeros((1,), jnp.float32),
    )
    return params


# ---------------------------------------------------------------------------
# Fold eval BatchNorm into W1/b1, lane-pad all weights, cast matmul weights to
# bf16, and pre-transpose the edge-MLP weights for the lane-dense edge kernel.
# ---------------------------------------------------------------------------
def prepare_params(params, in_dim, hidden):
    f_pad = _round_up(in_dim, LANE)
    h_pad = _round_up(hidden, LANE)
    prepared = {"convs": []}

    fin, fin_p = in_dim, f_pad
    for layer in params["convs"]:
        scale = layer["gamma"] / jnp.sqrt(layer["var"] + BN_EPS)      # (H,)
        w1f = layer["w1"] * scale[None, :]                            # (fin, H)
        b1f = (layer["b1"] - layer["mean"]) * scale + layer["beta"]   # (H,)
        w1p = jnp.zeros((fin_p, h_pad), jnp.float32).at[:fin, :hidden].set(w1f)
        b1p = jnp.zeros((1, h_pad), jnp.float32).at[:, :hidden].set(b1f[None, :])
        w2p = jnp.zeros((h_pad, h_pad), jnp.float32).at[:hidden, :hidden].set(layer["w2"])
        b2p = jnp.zeros((1, h_pad), jnp.float32).at[:, :hidden].set(layer["b2"][None, :])
        prepared["convs"].append(dict(
            w1=w1p.astype(jnp.bfloat16), b1=b1p,
            w2=w2p.astype(jnp.bfloat16), b2=b2p))
        fin, fin_p = hidden, h_pad

    # Edge MLP: src half of the concat lands at [:hidden], dst half at
    # [h_pad : h_pad + hidden] of the padded (2*h_pad) embedding.
    m = params["mlp"]
    w1p = jnp.zeros((2 * h_pad, h_pad), jnp.float32)
    w1p = w1p.at[:hidden, :hidden].set(m["w1"][:hidden])
    w1p = w1p.at[h_pad:h_pad + hidden, :hidden].set(m["w1"][hidden:])
    b1p = jnp.zeros((h_pad,), jnp.float32).at[:hidden].set(m["b1"])
    w2c = jnp.zeros((h_pad, 1), jnp.float32).at[:hidden].set(m["w2"])
    prepared["mlp"] = dict(
        w1t=w1p.T.astype(jnp.bfloat16),   # (h_pad, 2*h_pad)
        b1t=b1p.reshape(h_pad, 1),        # (h_pad, 1)  f32
        w2c=w2c,                          # (h_pad, 1)  f32 (VPU path, no M=1 matmul)
        b2=m["b2"].reshape(1, 1),         # (1, 1)      f32
    )
    return prepared


# ---------------------------------------------------------------------------
# Forward pass (glue in plain JAX, hot path in the Pallas kernels above)
# ---------------------------------------------------------------------------
def cx_model_forward(x, edge_index, prepared):
    n, f = x.shape
    f_pad = prepared["convs"][0]["w1"].shape[0]
    h_pad = prepared["convs"][0]["w2"].shape[1]

    # Pad N only to the lane quantum (128); tiles are divisors of n_pad so the
    # quadratic adjacency never carries tile-multiple padding.
    n_pad = _round_up(n, LANE)
    tm, tk = _pick_tiles(n_pad)

    src = edge_index[0]
    dst = edge_index[1]

    # Dense (A + I) built DIRECTLY in int8 (one scatter covers edges + self loops):
    # A[dst, src] += 1 (GIN sum aggregation), diag += 1 (self term).
    diag = jnp.arange(n, dtype=src.dtype)
    rows = jnp.concatenate([dst, diag])
    cols = jnp.concatenate([src, diag])
    adj = jnp.zeros((n_pad, n_pad), jnp.int8).at[rows, cols].add(1)

    h = jnp.zeros((n_pad, f_pad), jnp.bfloat16).at[:n, :f].set(x.astype(jnp.bfloat16))
    for layer in prepared["convs"]:
        h = gin_layer(adj, h, layer, tm=tm, tk=tk)   # bf16 in, bf16 out

    # edge_embeds = cat([x[src], x[dst]], -1); built in bf16 directly, transposed
    # + lane-padded so the edge axis is the lane axis of the edge kernel.
    e = src.shape[0]
    e_pad = _round_up(e, LANE)
    embeds = jnp.concatenate(
        [jnp.take(h, src, axis=0), jnp.take(h, dst, axis=0)], axis=-1)  # (E, 2*h_pad) bf16
    eT = jnp.zeros((2 * h_pad, e_pad), jnp.bfloat16).at[:, :e].set(embeds.T)

    scores = edge_mlp_softmax(eT, prepared["mlp"], e)
    return scores[0, :e]


if __name__ == "__main__":
    key = jax.random.PRNGKey(0)
    N, F, HIDDEN, NUM_LAYERS, E = 16, 8, 32, 2, 48

    kx, ke, kp = jax.random.split(key, 3)
    x = jax.random.normal(kx, (N, F), jnp.float32)
    edge_index = jax.random.randint(ke, (2, E), 0, N, dtype=jnp.int32)

    params = init_params(kp, F, HIDDEN, NUM_LAYERS)
    prepared = prepare_params(params, F, HIDDEN)

    forward = jax.jit(cx_model_forward)
    edge_scores = forward(x, edge_index, prepared)
    edge_scores = jax.block_until_ready(edge_scores)

    assert edge_scores.shape == (E,)
    assert bool(jnp.isfinite(edge_scores).all())
    assert jnp.allclose(jnp.sum(edge_scores), 1.0, atol=1e-3)
    print("KERNEL_OK")
</pallas_src>

<mosaic_0001>
module attributes {stable_mosaic.version = 11 : i64} {
  func.func @gin_layer_kernel(%arg0: i32, %arg1: i32, %arg2: memref<128x128xi8, #tpu.memory_space<vmem>>, %arg3: memref<128x128xbf16, #tpu.memory_space<vmem>>, %arg4: memref<128x128xbf16, #tpu.memory_space<vmem>>, %arg5: memref<1x128xf32, #tpu.memory_space<vmem>>, %arg6: memref<128x128xbf16, #tpu.memory_space<vmem>>, %arg7: memref<1x128xf32, #tpu.memory_space<vmem>>, %arg8: memref<128x128xbf16, #tpu.memory_space<vmem>>, %arg9: memref<128x128xf32, #tpu.memory_space<vmem>>) attributes {dimension_semantics = [#tpu.dimension_semantics<parallel>, #tpu.dimension_semantics<arbitrary>], iteration_bounds = array<i64: 1, 1>, scalar_prefetch = 0 : i64, scratch_operands = 1 : i64, tpu.core_type = #tpu.core_type<tc>, window_params = [{transform_indices = @transform_0, window_bounds = array<i64: 128, 128>}, {pipeline_mode = #tpu.pipeline_mode<synchronous>, transform_indices = @transform_1, window_bounds = array<i64: 128, 128>}, {pipeline_mode = #tpu.pipeline_mode<synchronous>, transform_indices = @transform_2, window_bounds = array<i64: 128, 128>}, {pipeline_mode = #tpu.pipeline_mode<synchronous>, transform_indices = @transform_3, window_bounds = array<i64: 1, 128>}, {pipeline_mode = #tpu.pipeline_mode<synchronous>, transform_indices = @transform_4, window_bounds = array<i64: 128, 128>}, {pipeline_mode = #tpu.pipeline_mode<synchronous>, transform_indices = @transform_5, window_bounds = array<i64: 1, 128>}, {transform_indices = @transform_6, window_bounds = array<i64: 128, 128>}]} {
    %c0_i32 = arith.constant 0 : i32
    %0 = arith.cmpi eq, %arg1, %c0_i32 : i32
    %1 = arith.extui %0 : i1 to i32
    %c0_i32_0 = arith.constant 0 : i32
    %2 = arith.cmpi ne, %1, %c0_i32_0 : i32
    scf.if %2 {
      %cst_9 = arith.constant 0.000000e+00 : f32
      %16 = vector.broadcast %cst_9 : f32 to vector<128x128xf32>
      %c0_10 = arith.constant 0 : index
      %c0_11 = arith.constant 0 : index
      %17 = vector.load %arg9[%c0_10, %c0_11] : memref<128x128xf32, #tpu.memory_space<vmem>>, vector<128x128xf32>
      tpu.vector_store %arg9[%c0_10, %c0_11], %16 {strides = array<i32>} : memref<128x128xf32, #tpu.memory_space<vmem>>, vector<128x128xf32>,
    } else {
    }
    %c0 = arith.constant 0 : index
    %c0_1 = arith.constant 0 : index
    %3 = vector.load %arg2[%c0, %c0_1] : memref<128x128xi8, #tpu.memory_space<vmem>>, vector<128x128xi8>
    %4 = arith.sitofp %3 : vector<128x128xi8> to vector<128x128xbf16>
    %c128_i32 = arith.constant 128 : i32
    %5 = arith.muli %arg1, %c128_i32 : i32
    %6 = tpu.assume_multiple %5, 128 : i32
    %7 = arith.index_cast %6 : i32 to index
    %c0_2 = arith.constant 0 : index
    %8 = vector.load %arg3[%7, %c0_2] : memref<128x128xbf16, #tpu.memory_space<vmem>>, vector<128x128xbf16>
    %c0_3 = arith.constant 0 : index
    %c0_4 = arith.constant 0 : index
    %9 = vector.load %arg9[%c0_3, %c0_4] : memref<128x128xf32, #tpu.memory_space<vmem>>, vector<128x128xf32>
    %cst = arith.constant dense<0.000000e+00> : vector<128x128xf32>
    %10 = tpu.matmul %4, %8, %cst {dimension_numbers = #tpu.dot_dimension_numbers<[1], [0], [0], [1], [0, 0, 1, 1], [], []>} : vector<128x128xbf16>, vector<128x128xbf16>, vector<128x128xf32> -> vector<128x128xf32>
    %11 = arith.addf %9, %10 : vector<128x128xf32>
    %c0_5 = arith.constant 0 : index
    %c0_6 = arith.constant 0 : index
    %12 = vector.load %arg9[%c0_5, %c0_6] : memref<128x128xf32, #tpu.memory_space<vmem>>, vector<128x128xf32>
    tpu.vector_store %arg9[%c0_5, %c0_6], %11 {strides = array<i32>} : memref<128x128xf32, #tpu.memory_space<vmem>>, vector<128x128xf32>,
    %c0_i32_7 = arith.constant 0 : i32
    %13 = arith.cmpi eq, %arg1, %c0_i32_7 : i32
    %14 = arith.extui %13 : i1 to i32
    %c0_i32_8 = arith.constant 0 : i32
    %15 = arith.cmpi ne, %14, %c0_i32_8 : i32
    scf.if %15 {
      %c0_9 = arith.constant 0 : index
      %c0_10 = arith.constant 0 : index
      %16 = vector.load %arg9[%c0_9, %c0_10] : memref<128x128xf32, #tpu.memory_space<vmem>>, vector<128x128xf32>
      %17 = arith.truncf %16 : vector<128x128xf32> to vector<128x128xbf16>
      %c0_11 = arith.constant 0 : index
      %c0_12 = arith.constant 0 : index
      %18 = vector.load %arg4[%c0_11, %c0_12] : memref<128x128xbf16, #tpu.memory_space<vmem>>, vector<128x128xbf16>
      %cst_13 = arith.constant dense<0.000000e+00> : vector<128x128xf32>
      %19 = tpu.matmul %17, %18, %cst_13 {dimension_numbers = #tpu.dot_dimension_numbers<[1], [0], [0], [1], [0, 0, 1, 1], [], []>} : vector<128x128xbf16>, vector<128x128xbf16>, vector<128x128xf32> -> vector<128x128xf32>
      %c0_14 = arith.constant 0 : index
      %c0_15 = arith.constant 0 : index
      %20 = vector.load %arg5[%c0_14, %c0_15] : memref<1x128xf32, #tpu.memory_space<vmem>>, vector<1x128xf32>
      %21 = vector.broadcast %20 : vector<1x128xf32> to vector<128x128xf32>
      %22 = arith.addf %19, %21 : vector<128x128xf32>
      %cst_16 = arith.constant 0.000000e+00 : f32
      %23 = vector.broadcast %cst_16 : f32 to vector<128x128xf32>
      %24 = arith.maximumf %22, %23 : vector<128x128xf32>
      %25 = arith.truncf %24 : vector<128x128xf32> to vector<128x128xbf16>
      %c0_17 = arith.constant 0 : index
      %c0_18 = arith.constant 0 : index
      %26 = vector.load %arg6[%c0_17, %c0_18] : memref<128x128xbf16, #tpu.memory_space<vmem>>, vector<128x128xbf16>
      %cst_19 = arith.constant dense<0.000000e+00> : vector<128x128xf32>
      %27 = tpu.matmul %25, %26, %cst_19 {dimension_numbers = #tpu.dot_dimension_numbers<[1], [0], [0], [1], [0, 0, 1, 1], [], []>} : vector<128x128xbf16>, vector<128x128xbf16>, vector<128x128xf32> -> vector<128x128xf32>
      %c0_20 = arith.constant 0 : index
      %c0_21 = arith.constant 0 : index
      %28 = vector.load %arg7[%c0_20, %c0_21] : memref<1x128xf32, #tpu.memory_space<vmem>>, vector<1x128xf32>
      %29 = vector.broadcast %28 : vector<1x128xf32> to vector<128x128xf32>
      %30 = arith.addf %27, %29 : vector<128x128xf32>
      %cst_22 = arith.constant 0.000000e+00 : f32
      %31 = vector.broadcast %cst_22 : f32 to vector<128x128xf32>
      %32 = arith.maximumf %30, %31 : vector<128x128xf32>
      %33 = arith.truncf %32 : vector<128x128xf32> to vector<128x128xbf16>
      %c0_23 = arith.constant 0 : index
      %c0_24 = arith.constant 0 : index
      %34 = vector.load %arg8[%c0_23, %c0_24] : memref<128x128xbf16, #tpu.memory_space<vmem>>, vector<128x128xbf16>
      tpu.vector_store %arg8[%c0_23, %c0_24], %33 {strides = array<i32>} : memref<128x128xbf16, #tpu.memory_space<vmem>>, vector<128x128xbf16>,
    } else {
    }
    return
  }
  func.func @transform_0(%arg0: i32, %arg1: i32) -> (i32, i32) {
    %c0_i32 = arith.constant 0 : i32
    return %arg0, %arg1 : i32, i32
  }
  func.func @transform_1(%arg0: i32, %arg1: i32) -> (i32, i32) {
    %c0_i32 = arith.constant 0 : i32
    %c0_i32_0 = arith.constant 0 : i32
    %c0_i32_1 = arith.constant 0 : i32
    return %c0_i32, %c0_i32_0 : i32, i32
  }
  func.func @transform_2(%arg0: i32, %arg1: i32) -> (i32, i32) {
    %c0_i32 = arith.constant 0 : i32
    %c0_i32_0 = arith.constant 0 : i32
    %c0_i32_1 = arith.constant 0 : i32
    return %c0_i32, %c0_i32_0 : i32, i32
  }
  func.func @transform_3(%arg0: i32, %arg1: i32) -> (i32, i32) {
    %c0_i32 = arith.constant 0 : i32
    %c0_i32_0 = arith.constant 0 : i32
    %c0_i32_1 = arith.constant 0 : i32
    return %c0_i32, %c0_i32_0 : i32, i32
  }
  func.func @transform_4(%arg0: i32, %arg1: i32) -> (i32, i32) {
    %c0_i32 = arith.constant 0 : i32
    %c0_i32_0 = arith.constant 0 : i32
    %c0_i32_1 = arith.constant 0 : i32
    return %c0_i32, %c0_i32_0 : i32, i32
  }
  func.func @transform_5(%arg0: i32, %arg1: i32) -> (i32, i32) {
    %c0_i32 = arith.constant 0 : i32
    %c0_i32_0 = arith.constant 0 : i32
    %c0_i32_1 = arith.constant 0 : i32
    return %c0_i32, %c0_i32_0 : i32, i32
  }
  func.func @transform_6(%arg0: i32, %arg1: i32) -> (i32, i32) {
    %c0_i32 = arith.constant 0 : i32
    %c0_i32_0 = arith.constant 0 : i32
    return %arg0, %c0_i32 : i32, i32
  }
}

module attributes {stable_mosaic.version = 11 : i64} {
  func.func @_edge_mlp_softmax_kernel(%arg0: memref<256x128xbf16, #tpu.memory_space<vmem>>, %arg1: memref<128x256xbf16, #tpu.memory_space<vmem>>, %arg2: memref<128x1xf32, #tpu.memory_space<vmem>>, %arg3: memref<128x1xf32, #tpu.memory_space<vmem>>, %arg4: memref<1x1xf32, #tpu.memory_space<vmem>>, %arg5: memref<1x128xf32, #tpu.memory_space<vmem>>) attributes {dimension_semantics = [], scalar_prefetch = 0 : i64, scratch_operands = 0 : i64, tpu.core_type = #tpu.core_type<tc>} {
    %c0 = arith.constant 0 : index
    %c0_0 = arith.constant 0 : index
    %0 = vector.load %arg1[%c0, %c0_0] : memref<128x256xbf16, #tpu.memory_space<vmem>>, vector<128x256xbf16>
    %c0_1 = arith.constant 0 : index
    %c0_2 = arith.constant 0 : index
    %1 = vector.load %arg0[%c0_1, %c0_2] : memref<256x128xbf16, #tpu.memory_space<vmem>>, vector<256x128xbf16>
    %cst = arith.constant dense<0.000000e+00> : vector<128x128xf32>
    %2 = tpu.matmul %0, %1, %cst {dimension_numbers = #tpu.dot_dimension_numbers<[1], [0], [0], [1], [0, 0, 1, 1], [], []>} : vector<128x256xbf16>, vector<256x128xbf16>, vector<128x128xf32> -> vector<128x128xf32>
    %c0_3 = arith.constant 0 : index
    %c0_4 = arith.constant 0 : index
    %3 = vector.load %arg2[%c0_3, %c0_4] : memref<128x1xf32, #tpu.memory_space<vmem>>, vector<128x1xf32>
    %4 = vector.broadcast %3 : vector<128x1xf32> to vector<128x128xf32>
    %5 = arith.addf %2, %4 : vector<128x128xf32>
    %cst_5 = arith.constant 0.000000e+00 : f32
    %6 = vector.broadcast %cst_5 : f32 to vector<128x128xf32>
    %7 = arith.maximumf %5, %6 : vector<128x128xf32>
    %c0_6 = arith.constant 0 : index
    %c0_7 = arith.constant 0 : index
    %8 = vector.load %arg3[%c0_6, %c0_7] : memref<128x1xf32, #tpu.memory_space<vmem>>, vector<128x1xf32>
    %9 = vector.broadcast %8 : vector<128x1xf32> to vector<128x128xf32>
    %10 = arith.mulf %7, %9 : vector<128x128xf32>
    %cst_8 = arith.constant dense<0.000000e+00> : vector<128xf32>
    %11 = vector.multi_reduction <add>, %10, %cst_8 [0] : vector<128x128xf32> to vector<128xf32>
    %12 = vector.shape_cast %11 : vector<128xf32> to vector<1x128xf32>
    %c0_9 = arith.constant 0 : index
    %c0_10 = arith.constant 0 : index
    %13 = vector.load %arg4[%c0_9, %c0_10] : memref<1x1xf32, #tpu.memory_space<vmem>>, vector<1x1xf32>
    %14 = vector.broadcast %13 : vector<1x1xf32> to vector<1x128xf32>
    %15 = arith.addf %12, %14 : vector<1x128xf32>
    %16 = tpu.iota {dimensions = array<i32: 1>} : vector<1x128xi32>
    %c48_i32 = arith.constant 48 : i32
    %17 = vector.broadcast %c48_i32 : i32 to vector<1x128xi32>
    %18 = arith.cmpi slt, %16, %17 : vector<1x128xi32>
    %cst_11 = arith.constant 0xFF800000 : f32
    %19 = vector.broadcast %cst_11 : f32 to vector<1x128xf32>
    %20 = arith.select %18, %15, %19 : vector<1x128xi1>, vector<1x128xf32>
    %cst_12 = arith.constant dense<0xFF800000> : vector<1xf32>
    %21 = vector.multi_reduction <maximumf>, %20, %cst_12 [1] : vector<1x128xf32> to vector<1xf32>
    %22 = vector.shape_cast %21 : vector<1xf32> to vector<1x1xf32>
    %23 = vector.broadcast %22 : vector<1x1xf32> to vector<1x128xf32>
    %24 = arith.subf %20, %23 : vector<1x128xf32>
    %25 = math.exp %24 : vector<1x128xf32>
    %cst_13 = arith.constant 0.000000e+00 : f32
    %26 = vector.broadcast %cst_13 : f32 to vector<1x128xf32>
    %27 = arith.select %18, %25, %26 : vector<1x128xi1>, vector<1x128xf32>
    %cst_14 = arith.constant dense<0.000000e+00> : vector<1xf32>
    %28 = vector.multi_reduction <add>, %27, %cst_14 [1] : vector<1x128xf32> to vector<1xf32>
    %29 = vector.shape_cast %28 : vector<1xf32> to vector<1x1xf32>
    %30 = vector.broadcast %29 : vector<1x1xf32> to vector<1x128xf32>
    %31 = arith.divf %27, %30 : vector<1x128xf32>
    %c0_15 = arith.constant 0 : index
    %c0_16 = arith.constant 0 : index
    %32 = vector.load %arg5[%c0_15, %c0_16] : memref<1x128xf32, #tpu.memory_space<vmem>>, vector<1x128xf32>
    tpu.vector_store %arg5[%c0_15, %c0_16], %31 {strides = array<i32>} : memref<1x128xf32, #tpu.memory_space<vmem>>, vector<1x128xf32>,
    return
  }
}

</mosaic_0001>

<bundles_post_ra>
// kernel: cx_model_forward.5
= control target key start
LH: loop header
LB: loop body
LE: loop exit
PB: predicated region body
PF: predicated region fallthrough
CT: control target
= control target key end

     0   :  { %v778_v1 = vmov 0   ;;  %s1049_s0 = inlined_call_operand.vmem [shape: bf16[256,128], index: 0, kind: input, shape index: {}]   ;;  %s1050_s4 = inlined_call_operand.<no memory space> [shape: f32[1,1], index: 4, kind: input, shape index: {}]   ;;  %s1051_s1 = inlined_call_operand.vmem [shape: bf16[128,256], index: 1, kind: input, shape index: {}]   ;;  %s1052_s2 = inlined_call_operand.vmem [shape: f32[128,1], index: 2, kind: input, shape index: {}]   ;;  %s1053_s3 = inlined_call_operand.vmem [shape: f32[128,1], index: 3, kind: input, shape index: {}]   ;;  %s1054_s5 = inlined_call_operand.vmem [shape: f32[1,128], index: 5, kind: output, shape index: {}]  }
   0x1   :  { %v734_v0 = vld [vmem:[%s1049_s0 + $0x40] sm:$0xff]   ;;  %732 = vset.pattern.permute.xlu0 %v778_v1  ;;  %733 = vset.pattern.permute.xlu1 %v778_v1  ;;  %v10_v2 = vstv %s1050_s4  ;;  %v736_v4 = vld [vmem:[%s1049_s0 + $0x48] sm:$0xff]   ;;  %v738_v6 = vld [vmem:[%s1049_s0 + $0x50] sm:$0xff]  }
   0x2   :  { %v735_v3 = vld [vmem:[%s1049_s0] sm:$0xff]   ;;  %11 = vst [vmem:[#allocation2] sm:$0x1] %v10_v2  ;;  %651 = vmatprep.subr.bf16.mxu0 %v734_v0  ;;  %715 = vmatprep.subr.bf16.mxu1 %v734_v0  ;;  %v737_v5 = vld [vmem:[%s1049_s0 + $0x8] sm:$0xff]   ;;  %v739_v7 = vld [vmem:[%s1049_s0 + $0x10] sm:$0xff]  }
   0x3   :  { %652 = vmatpush3.bf16.msra.mxu0 %v735_v3  ;;  %723 = vmatpush3.bf16.msra.mxu1 %v735_v3  ;;  %v740_v8 = vld [vmem:[%s1049_s0 + $0x58] sm:$0xff]   ;;  %v742_v10 = vld [vmem:[%s1049_s0 + $0x60] sm:$0xff]   ;;  %v744_v12 = vld [vmem:[%s1049_s0 + $0x68] sm:$0xff]  }
   0x4   :  { %653 = vmatprep.subr.bf16.mxu0 %v736_v4  ;;  %716 = vmatprep.subr.bf16.mxu1 %v736_v4  ;;  %v741_v9 = vld [vmem:[%s1049_s0 + $0x18] sm:$0xff]   ;;  %v743_v11 = vld [vmem:[%s1049_s0 + $0x20] sm:$0xff]   ;;  %v745_v14 = vld [vmem:[%s1049_s0 + $0x28] sm:$0xff]  }
   0x5   :  { %v752_v13 = vld [vmem:[%s1051_s1 + $0x4] ss:$8 sps:$4 sm:$0xff]   ;;  %v746_v17 = vld [vmem:[%s1049_s0 + $0x70] sm:$0xff]   ;;  %v748_v21 = vld [vmem:[%s1049_s0 + $0x78] sm:$0xff]  }
   0x6   :  { %v755_v15 = vld [vmem:[%s1051_s1 + $0x44] ss:$8 sps:$4 sm:$0xff]   ;;  %375 = vmatprep.mubr.bf16.mxu0 %v752_v13  ;;  %v747_v18 = vld [vmem:[%s1049_s0 + $0x30] sm:$0xff]   ;;  %v749_v22 = vld [vmem:[%s1049_s0 + $0x38] sm:$0xff]  }
   0x7   :  { %654 = vmatpush3.bf16.msra.mxu0 %v737_v5  ;;  %724 = vmatpush3.bf16.msra.mxu1 %v737_v5  ;;  %v71_v16 = vld [vmem:[%s1052_s2] sm:$0xff]  ;;  %v73_v19 = vld [vmem:[%s1052_s2 + $0x10] sm:$0xff]  ;;  %v72_v20 = vld [vmem:[%s1052_s2 + $0x8] sm:$0xff] }
   0x8   :  { %655 = vmatprep.subr.bf16.mxu0 %v738_v6  ;;  %717 = vmatprep.subr.bf16.mxu1 %v738_v6  ;;  %v74_v23 = vld [vmem:[%s1052_s2 + $0x18] sm:$0xff]  ;;  %v456_v24 = vld [vmem:[%s1053_s3] sm:$0xff]  ;;  %v457_v27 = vld [vmem:[%s1053_s3 + $0x8] sm:$0xff] }
   0x9   :  { %407 = vmatprep.mubr.bf16.mxu1 %v755_v15  ;;  %89 = vperm.xlu0 %732, %v71_v16   ;;  %v750_v25 = vld [vmem:[%s1051_s1] ss:$8 sps:$4 sm:$0xff]   ;;  %v756_v28 = vld [vmem:[%s1051_s1 + $0x14] ss:$8 sps:$4 sm:$0xff]   ;;  %v760_v33 = vld [vmem:[%s1051_s1 + $0x10] ss:$8 sps:$4 sm:$0xff]  }
   0xa   :  { %99 = vperm.xlu1 %733, %v73_v19   ;;  %v753_v26 = vld [vmem:[%s1051_s1 + $0x40] ss:$8 sps:$4 sm:$0xff]   ;;  %v758_v29 = vld [vmem:[%s1051_s1 + $0x54] ss:$8 sps:$4 sm:$0xff]   ;;  %v761_v34 = vld [vmem:[%s1051_s1 + $0x50] ss:$8 sps:$4 sm:$0xff]  }
   0xb   :  { %656 = vmatpush3.bf16.msra.mxu0 %v739_v7  ;;  %725 = vmatpush3.bf16.msra.mxu1 %v739_v7  ;;  %v75_v30 = vld [vmem:[%s1052_s2 + $0x20] sm:$0xff]  ;;  %v458_v31 = vld [vmem:[%s1053_s3 + $0x10] sm:$0xff]  ;;  %v76_v32 = vld [vmem:[%s1052_s2 + $0x28] sm:$0xff] }
   0xc   :  { %657 = vmatprep.subr.bf16.mxu0 %v740_v8  ;;  %718 = vmatprep.subr.bf16.mxu1 %v740_v8  ;;  %v459_v35 = vld [vmem:[%s1053_s3 + $0x18] sm:$0xff]  ;;  %v762_v36 = vld [vmem:[%s1051_s1 + $0x24] ss:$8 sps:$4 sm:$0xff]   ;;  %v77_v38 = vld [vmem:[%s1052_s2 + $0x30] sm:$0xff] }
   0xd   :  { %94 = vperm.xlu0 %732, %v72_v20   ;;  %v764_v37 = vld [vmem:[%s1051_s1 + $0x64] ss:$8 sps:$4 sm:$0xff]   ;;  %v78_v40 = vld [vmem:[%s1052_s2 + $0x38] sm:$0xff]  ;;  %v766_v41 = vld [vmem:[%s1051_s1 + $0x20] ss:$8 sps:$4 sm:$0xff]  }
   0xe   :  { %104 = vperm.xlu1 %733, %v74_v23   ;;  %v460_v39 = vld [vmem:[%s1053_s3 + $0x20] sm:$0xff]  ;;  %v461_v43 = vld [vmem:[%s1053_s3 + $0x28] sm:$0xff]  ;;  %v768_v44 = vld [vmem:[%s1051_s1 + $0x34] ss:$8 sps:$4 sm:$0xff]  }
   0xf   :  { %658 = vmatpush3.bf16.msra.mxu0 %v741_v9  ;;  %726 = vmatpush3.bf16.msra.mxu1 %v741_v9  ;;  %v767_v42 = vld [vmem:[%s1051_s1 + $0x60] ss:$8 sps:$4 sm:$0xff]   ;;  %v770_v45 = vld [vmem:[%s1051_s1 + $0x74] ss:$8 sps:$4 sm:$0xff]   ;;  %v772_v49 = vld [vmem:[%s1051_s1 + $0x30] ss:$8 sps:$4 sm:$0xff]  }
  0x10   :  { %659 = vmatprep.subr.bf16.mxu0 %v742_v10  ;;  %719 = vmatprep.subr.bf16.mxu1 %v742_v10  ;;  %v79_v46 = vld [vmem:[%s1052_s2 + $0x40] sm:$0xff]  ;;  %v462_v47 = vld [vmem:[%s1053_s3 + $0x30] sm:$0xff]  ;;  %v80_v48 = vld [vmem:[%s1052_s2 + $0x48] sm:$0xff] }
  0x11   :  { %474 = vperm.xlu0 %732, %v456_v24   ;;  %v773_v50 = vld [vmem:[%s1051_s1 + $0x70] ss:$8 sps:$4 sm:$0xff]   ;;  %v464_v53 = vld [vmem:[%s1053_s3 + $0x40] sm:$0xff]  ;;  %v465_v55 = vld [vmem:[%s1053_s3 + $0x48] sm:$0xff] }
  0x12   :  { %479 = vperm.xlu1 %733, %v457_v27   ;;  %v463_v51 = vld [vmem:[%s1053_s3 + $0x38] sm:$0xff]  ;;  %v81_v52 = vld [vmem:[%s1052_s2 + $0x50] sm:$0xff]  ;;  %v83_v56 = vld [vmem:[%s1052_s2 + $0x60] sm:$0xff] }
  0x13   :  { %660 = vmatpush3.bf16.msra.mxu0 %v743_v11  ;;  %727 = vmatpush3.bf16.msra.mxu1 %v743_v11  ;;  %v82_v54 = vld [vmem:[%s1052_s2 + $0x58] sm:$0xff]  ;;  %v466_v57 = vld [vmem:[%s1053_s3 + $0x50] sm:$0xff]  ;;  %v84_v58 = vld [vmem:[%s1052_s2 + $0x68] sm:$0xff] }
  0x14   :  { %661 = vmatprep.subr.bf16.mxu0 %v744_v12  ;;  %720 = vmatprep.subr.bf16.mxu1 %v744_v12  ;;  %v467_v59 = vld [vmem:[%s1053_s3 + $0x58] sm:$0xff]  ;;  %v85_v60 = vld [vmem:[%s1052_s2 + $0x70] sm:$0xff]  ;;  %v468_v61 = vld [vmem:[%s1053_s3 + $0x60] sm:$0xff] }
  0x15   :  { %109 = vperm.xlu0 %732, %v75_v30   ;;  %v86_v62 = vld [vmem:[%s1052_s2 + $0x78] sm:$0xff]  ;;  %v469_v63 = vld [vmem:[%s1053_s3 + $0x68] sm:$0xff]  ;;  %v470_v0 = vld [vmem:[%s1053_s3 + $0x70] sm:$0xff] }
  0x16   :  { %484 = vperm.xlu1 %733, %v458_v31   ;;  %v471_v1 = vld [vmem:[%s1053_s3 + $0x78] sm:$0xff]  ;;  %v589_v2 = vld [vmem:[#allocation2] sm:$0x1] }
  0x17   :  { %662 = vmatpush3.bf16.msra.mxu0 %v745_v14  ;;  %728 = vmatpush3.bf16.msra.mxu1 %v745_v14 }
  0x18   :  { %663 = vmatprep.subr.bf16.mxu0 %v746_v17  ;;  %721 = vmatprep.subr.bf16.mxu1 %v746_v17 }
  0x19   :  { %114 = vperm.xlu0 %732, %v76_v32  }
  0x1a   :  { %489 = vperm.xlu1 %733, %v459_v35  }
  0x1b   :  { %664 = vmatpush3.bf16.msra.mxu0 %v747_v18  ;;  %729 = vmatpush3.bf16.msra.mxu1 %v747_v18 }
  0x1c   :  { %665 = vmatprep.subr.bf16.mxu0 %v748_v21  ;;  %722 = vmatprep.subr.bf16.mxu1 %v748_v21 }
  0x1d   :  { %119 = vperm.xlu0 %732, %v77_v38  }
  0x1e   :  { %494 = vperm.xlu1 %733, %v460_v39  }
  0x1f   :  { %666 = vmatpush3.bf16.msra.mxu0 %v749_v22  ;;  %730 = vmatpush3.bf16.msra.mxu1 %v749_v22 }
  0x21   :  { %124 = vperm.xlu0 %732, %v78_v40  }
  0x22   :  { %376 = vmatmul.mubr.bf16.vlgmr.msra.gmra.mrb[0].mxu0 %v750_v25  ;;  %408 = vmatmul.mubr.bf16.vlgmr.msra.gmra.mrb[0].mxu1 %v753_v26 }
  0x23   :  { %383 = vmatprep.mubr.bf16.mxu0 %v756_v28  ;;  %415 = vmatprep.mubr.bf16.mxu1 %v758_v29 }
  0x24   :  { %499 = vperm.xlu1 %733, %v461_v43  }
  0x25   :  { %129 = vperm.xlu0 %732, %v79_v46  }
  0x28   :  { %504 = vperm.xlu1 %733, %v462_v47  }
  0x29   :  { %134 = vperm.xlu0 %732, %v80_v48  }
  0x2a   :  { %384 = vmatmul.mubr.bf16.gmra.mrb[4].mxu0 %v760_v33  ;;  %416 = vmatmul.mubr.bf16.gmra.mrb[4].mxu1 %v761_v34 }
  0x2b   :  { %391 = vmatprep.mubr.bf16.mxu0 %v762_v36  ;;  %423 = vmatprep.mubr.bf16.mxu1 %v764_v37 }
  0x2c   :  { %509 = vperm.xlu1 %733, %v463_v51  }
  0x2d   :  { %139 = vperm.xlu0 %732, %v81_v52  }
  0x30   :  { %514 = vperm.xlu1 %733, %v464_v53  }
  0x31   :  { %144 = vperm.xlu0 %732, %v82_v54  }
  0x32   :  { %392 = vmatmul.mubr.bf16.gmra.mrb[8].mxu0 %v766_v41  ;;  %424 = vmatmul.mubr.bf16.gmra.mrb[8].mxu1 %v767_v42 }
  0x33   :  { %399 = vmatprep.mubr.bf16.mxu0 %v768_v44  ;;  %431 = vmatprep.mubr.bf16.mxu1 %v770_v45 }
  0x34   :  { %519 = vperm.xlu1 %733, %v465_v55  }
  0x35   :  { %149 = vperm.xlu0 %732, %v83_v56  }
  0x38   :  { %524 = vperm.xlu1 %733, %v466_v57  }
  0x39   :  { %154 = vperm.xlu0 %732, %v84_v58  }
  0x3a   :  { %400 = vmatmul.mubr.bf16.gmra.mrb[12].mxu0 %v772_v49  ;;  %432 = vmatmul.mubr.bf16.gmra.mrb[12].mxu1 %v773_v50 }
  0x3c   :  { %529 = vperm.xlu1 %733, %v467_v59  }
  0x3d   :  { %159 = vperm.xlu0 %732, %v85_v60  }
  0x40   :  { %534 = vperm.xlu1 %733, %v468_v61  }
  0x41   :  { %164 = vperm.xlu0 %732, %v86_v62  }
  0x44   :  { %539 = vperm.xlu1 %733, %v469_v63  }
  0x45   :  { %544 = vperm.xlu0 %732, %v470_v0  }
  0x48   :  { %549 = vperm.xlu1 %733, %v471_v1  }
  0x49   :  { %592 = vperm.xlu0 %732, %v589_v2  }
  0x88   :  { %v90_v3 = vpop.permute.xlu0 %89 }
  0x89   :  { %v100_v4 = vpop.permute.xlu1 %99 }
  0x8c   :  { %v95_v5 = vpop.permute.xlu0 %94 }
  0x8d   :  { %v105_v6 = vpop.permute.xlu1 %104 }
  0x90   :  { %v475_v7 = vpop.permute.xlu0 %474 }
  0x91   :  { %v480_v8 = vpop.permute.xlu1 %479 }
  0x94   :  { %v1004_v9 = vpop.permute.xlu0 %109 }
  0x95   :  { %v485_v10 = vpop.permute.xlu1 %484 }
  0x98   :  { %v1006_v11 = vpop.permute.xlu0 %114 }
  0x99   :  { %v490_v12 = vpop.permute.xlu1 %489 }
  0x9c   :  { %v1008_v13 = vpop.permute.xlu0 %119 }
  0x9d   :  { %v1010_v14 = vpop.permute.xlu1 %494 }
  0xa0   :  { %v1012_v15 = vpop.permute.xlu0 %124 }
  0xa3   :  { %v1014_v16 = vpop.permute.xlu1 %499 }
  0xa4   :  { %v1016_v17 = vpop.permute.xlu0 %129 }
  0xa7   :  { %v1018_v18 = vpop.permute.xlu1 %504 }
  0xa8   :  { %v1020_v19 = vpop.permute.xlu0 %134 }
  0xab   :  { %v1022_v20 = vpop.permute.xlu1 %509 }
  0xac   :  { %v1028_v36 = vpop.permute.xlu0 %139 }
  0xaf   :  { %v1030_v37 = vpop.permute.xlu1 %514 }
  0xb0   :  { %v145_v57 = vpop.permute.xlu0 %144 }
  0xb3   :  { %v520_v58 = vpop.permute.xlu1 %519 }
  0xf5   :  { %v667_v21 = vpop.f32.mrb[0].mxu0  ;;  %v691_v22 = vpop.f32.mrb[0].mxu1 }
  0xf6   :  { %v668_v23 = vpop.f32.mrb[1].mxu0  ;;  %v692_v24 = vpop.f32.mrb[1].mxu1 }
  0xf7   :  { %v669_v25 = vadd.f32 %v668_v23, %v667_v21  ;;  %v1024_v26 = vadd.f32 %v692_v24, %v691_v22  ;;  %v670_v27 = vpop.f32.mrb[2].mxu0  ;;  %v694_v28 = vpop.f32.mrb[2].mxu1 }
  0xf8   :  { %v671_v29 = vpop.f32.mrb[3].mxu0  ;;  %v695_v30 = vpop.f32.mrb[3].mxu1 }
  0xf9   :  { %v378_v31 = vadd.f32 %v669_v25, %v90_v3  ;;  %v672_v32 = vadd.f32 %v671_v29, %v670_v27  ;;  %v1026_v33 = vadd.f32 %v695_v30, %v694_v28  ;;  %v150_v27 = vpop.permute.xlu0 %149  ;;  %v525_v28 = vpop.permute.xlu1 %524 }
  0xfb   :  { %v440_v34 = vmax.f32 %v378_v31, 0.0  ;;  %v381_v35 = vadd.f32 %v672_v32, %v95_v5 }
  0xfd   :  { %v441_v38 = vmax.f32 %v381_v35, 0.0  ;;  %v673_v39 = vpop.f32.mrb[4].mxu0  ;;  %v697_v40 = vpop.f32.mrb[4].mxu1  ;;  %v552_v43 = vmul.f32 %v475_v7, %v440_v34 }
  0xfe   :  { %v674_v41 = vpop.f32.mrb[5].mxu0  ;;  %v698_v42 = vpop.f32.mrb[5].mxu1 }
  0xff   :  { %v553_v44 = vmul.f32 %v480_v8, %v441_v38  ;;  %v675_v45 = vadd.f32 %v674_v41, %v673_v39  ;;  %v699_v46 = vadd.f32 %v698_v42, %v697_v40  ;;  %v676_v47 = vpop.f32.mrb[6].mxu0  ;;  %v700_v48 = vpop.f32.mrb[6].mxu1 }
 0x100   :  { %v677_v49 = vpop.f32.mrb[7].mxu0  ;;  %v701_v50 = vpop.f32.mrb[7].mxu1 }
 0x101   :  { %v568_v51 = vadd.f32 %v553_v44, %v552_v43  ;;  %v386_v52 = vadd.f32 %v675_v45, %v100_v4  ;;  %v678_v53 = vadd.f32 %v677_v49, %v676_v47  ;;  %v702_v54 = vadd.f32 %v701_v50, %v700_v48  ;;  %v155_v47 = vpop.permute.xlu0 %154 }
 0x102   :  { %v413_v49 = vadd.f32 %v1026_v33, %v1020_v19 }
 0x103   :  { %v442_v55 = vmax.f32 %v386_v52, 0.0  ;;  %v389_v56 = vadd.f32 %v678_v53, %v105_v6  ;;  %v418_v53 = vadd.f32 %v699_v46, %v1028_v36 }
 0x105   :  { %v554_v59 = vmul.f32 %v485_v10, %v442_v55  ;;  %v443_v60 = vmax.f32 %v389_v56, 0.0  ;;  %v679_v61 = vpop.f32.mrb[8].mxu0  ;;  %v703_v62 = vpop.f32.mrb[8].mxu1 }
 0x106   :  { %v680_v63 = vpop.f32.mrb[9].mxu0  ;;  %v704_v0 = vpop.f32.mrb[9].mxu1 }
 0x107   :  { %v569_v1 = vadd.f32 %v568_v51, %v554_v59  ;;  %v555_v2 = vmul.f32 %v490_v12, %v443_v60  ;;  %v681_v3 = vadd.f32 %v680_v63, %v679_v61  ;;  %v705_v5 = vadd.f32 %v704_v0, %v703_v62  ;;  %v682_v7 = vpop.f32.mrb[10].mxu0  ;;  %v706_v8 = vpop.f32.mrb[10].mxu1 }
 0x108   :  { %v683_v21 = vpop.f32.mrb[11].mxu0  ;;  %v707_v4 = vpop.f32.mrb[11].mxu1  ;;  %v450_v62 = vmax.f32 %v418_v53, 0.0 }
 0x109   :  { %v570_v22 = vadd.f32 %v569_v1, %v555_v2  ;;  %v394_v23 = vadd.f32 %v681_v3, %v1004_v9  ;;  %v684_v6 = vadd.f32 %v683_v21, %v682_v7  ;;  %v708_v24 = vadd.f32 %v707_v4, %v706_v8  ;;  %v530_v51 = vpop.permute.xlu1 %529  ;;  %v160_v60 = vpop.permute.xlu0 %159 }
 0x10a   :  { %v426_v19 = vadd.f32 %v705_v5, %v150_v27  ;;  %v562_v36 = vmul.f32 %v525_v28, %v450_v62 }
 0x10b   :  { %v444_v25 = vmax.f32 %v394_v23, 0.0  ;;  %v397_v10 = vadd.f32 %v684_v6, %v1006_v11  ;;  %v410_v11 = vadd.f32 %v1024_v26, %v1016_v17  ;;  %v449_v17 = vmax.f32 %v413_v49, 0.0 }
 0x10c   :  { %v421_v26 = vadd.f32 %v702_v54, %v145_v57  ;;  %v429_v1 = vadd.f32 %v708_v24, %v155_v47  ;;  %v452_v46 = vmax.f32 %v426_v19, 0.0 }
 0x10d   :  { %v556_v29 = vmul.f32 %v1010_v14, %v444_v25  ;;  %v445_v30 = vmax.f32 %v397_v10, 0.0  ;;  %v685_v12 = vpop.f32.mrb[12].mxu0  ;;  %v709_v31 = vpop.f32.mrb[12].mxu1  ;;  %v448_v52 = vmax.f32 %v410_v11, 0.0 }
 0x10e   :  { %v686_v32 = vpop.f32.mrb[13].mxu0  ;;  %v710_v34 = vpop.f32.mrb[13].mxu1  ;;  %v451_v0 = vmax.f32 %v421_v26, 0.0  ;;  %v453_v57 = vmax.f32 %v429_v1, 0.0 }
 0x10f   :  { %v571_v35 = vadd.f32 %v570_v22, %v556_v29  ;;  %v557_v38 = vmul.f32 %v1014_v16, %v445_v30  ;;  %v687_v39 = vadd.f32 %v686_v32, %v685_v12  ;;  %v711_v40 = vadd.f32 %v710_v34, %v709_v31  ;;  %v688_v9 = vpop.f32.mrb[14].mxu0  ;;  %v712_v41 = vpop.f32.mrb[14].mxu1 }
 0x110   :  { %v689_v42 = vpop.f32.mrb[15].mxu0  ;;  %v713_v43 = vpop.f32.mrb[15].mxu1  ;;  %v560_v61 = vmul.f32 %v1030_v37, %v448_v52  ;;  %v563_v54 = vmul.f32 %v530_v51, %v451_v0  ;;  %v595_v29 = vlaneseq }
 0x111   :  { %v572_v44 = vadd.f32 %v571_v35, %v557_v38  ;;  %v402_v14 = vadd.f32 %v687_v39, %v1008_v13  ;;  %v690_v45 = vadd.f32 %v689_v42, %v688_v9  ;;  %v714_v48 = vadd.f32 %v713_v43, %v712_v41  ;;  %v535_v63 = vpop.permute.xlu1 %534  ;;  %v165_v7 = vpop.permute.xlu0 %164 }
 0x112   :  { %v564_v4 = vmul.f32 %v535_v63, %v452_v46  ;;  %v596_v31 = vshrl.u32 %v595_v29, 7 }
 0x113   :  { %v446_v50 = vmax.f32 %v402_v14, 0.0  ;;  %v405_v16 = vadd.f32 %v690_v45, %v1012_v15  ;;  %v561_v15 = vmul.f32 %v520_v58, %v449_v17 }
 0x114   :  { %v597_v35 = vsub.s32 0, %v596_v31 }
 0x115   :  { %v558_v55 = vmul.f32 %v1018_v18, %v446_v50  ;;  %v447_v56 = vmax.f32 %v405_v16, 0.0  ;;  %v434_v18 = vadd.f32 %v711_v40, %v160_v60  ;;  %v540_v21 = vpop.permute.xlu1 %539  ;;  %v545_v58 = vpop.permute.xlu0 %544  ;;  %v601_v40 = vand.u32 127, %v595_v29 }
 0x116   :  { %v565_v5 = vmul.f32 %v540_v21, %v453_v57 }
 0x117   :  { %v573_v59 = vadd.f32 %v572_v44, %v558_v55  ;;  %v559_v13 = vmul.f32 %v1022_v20, %v447_v56  ;;  %v437_v20 = vadd.f32 %v714_v48, %v165_v7  ;;  %v454_v37 = vmax.f32 %v434_v18, 0.0 }
 0x118   :  { %vm602_vm0 = vcmp.lt.s32.totalorder %v601_v40, 48 }
 0x119   :  { %v574_v33 = vadd.f32 %v573_v59, %v559_v13  ;;  %v455_v23 = vmax.f32 %v437_v20, 0.0  ;;  %v566_v25 = vmul.f32 %v545_v58, %v454_v37  ;;  %v550_v10 = vpop.permute.xlu1 %549  ;;  %v593_v39 = vpop.permute.xlu0 %592 }
 0x11a   :  { %v598_v41 = vrot.slane %v593_v39, %v597_v35 }
 0x11b   :  { %v575_v2 = vadd.f32 %v574_v33, %v560_v61  ;;  %v567_v27 = vmul.f32 %v550_v10, %v455_v23 }
 0x11d   :  { %v576_v3 = vadd.f32 %v575_v2, %v561_v15 }
 0x11f   :  { %v577_v8 = vadd.f32 %v576_v3, %v562_v36 }
 0x121   :  { %v578_v22 = vadd.f32 %v577_v8, %v563_v54 }
 0x123   :  { %v579_v6 = vadd.f32 %v578_v22, %v564_v4 }
 0x125   :  { %v580_v24 = vadd.f32 %v579_v6, %v565_v5 }
 0x127   :  { %v581_v28 = vadd.f32 %v580_v24, %v566_v25 }
 0x129   :  { %v582_v30 = vadd.f32 %v581_v28, %v567_v27 }
 0x12b   :  { %v583_v12 = vrot.slane %v582_v30, 4 }
 0x12d   :  { %v584_v32 = vadd.f32 %v583_v12, %v582_v30 }
 0x12f   :  { %v585_v34 = vrot.slane %v584_v32, 2 }
 0x131   :  { %v586_v38 = vadd.f32 %v585_v34, %v584_v32 }
 0x133   :  { %v587_v9 = vrot.slane %v586_v38, 1 }
 0x135   :  { %v588_v42 = vadd.f32 %v587_v9, %v586_v38 }
 0x137   :  { %v599_v43 = vadd.f32 %v598_v41, %v588_v42 }
 0x139   :  { %v603_v11 = vsel %vm602_vm0, %v599_v43, -inf }
 0x13a   :  { %604 = vmax.xlane.f32.xlu1 %v603_v11 }
 0x1c7   :  { %v605_v44 = vpop.xlane.xlu1 %604 }
 0x1c8   :  { %v606_v14 = vsub.f32 %v603_v11, %v605_v44 }
 0x1ca   :  { %v607_v45 = vmul.f32 1.442695, %v606_v14 }
 0x1cc   :  { %774 = vpow2.f32 %v607_v45 }
 0x1d6   :  { %v775_v47 = vpop.eup %774 }
 0x1d7   :  { %v609_v48 = vsel %vm602_vm0, %v775_v47, 0.0 }
 0x1d8   :  { %610 = vadd.xlane.f32.xlu0 %v609_v48 }
 0x265   :  { %v611_v49 = vpop.xlane.xlu0 %610 }
 0x266   :  { %776 = vrcp.f32 %v611_v49 }
 0x270   :  { %v777_v50 = vpop.eup %776 }
 0x271   :  { %v613_v16 = vmul.f32 %v777_v50, %v609_v48 }
 0x273   :  { %614 = vst [vmem:[%s1054_s5] sm:$0x1] %v613_v16 }

// kernel: cx_model_forward.3
= control target key start
LH: loop header
LB: loop body
LE: loop exit
PB: predicated region body
PF: predicated region fallthrough
CT: control target
= control target key end

     0   :  { %s1309_s1 = inlined_call_operand.vmem [shape: bf16[128,128], index: 1, kind: input, shape index: {}]   ;;  %s1310_s0 = inlined_call_operand.vmem [shape: s8[128,128], index: 0, kind: input, shape index: {}]   ;;  %s1311_s2 = inlined_call_operand.vmem [shape: bf16[128,128], index: 2, kind: input, shape index: {}]   ;;  %s1312_s4 = inlined_call_operand.vmem [shape: bf16[128,128], index: 4, kind: input, shape index: {}]   ;;  %s1313_s3 = inlined_call_operand.vmem [shape: f32[1,128], index: 3, kind: input, shape index: {}]   ;;  %s1314_s5 = inlined_call_operand.vmem [shape: f32[1,128], index: 5, kind: input, shape index: {}]   ;;  %s1315_s6 = inlined_call_operand.vmem [shape: bf16[128,128], index: 6, kind: output, shape index: {}]  }
   0x1   :  { %v1100_v0 = vld [vmem:[%s1309_s1] sm:$0xff]   ;;  %v1101_v1 = vld [vmem:[%s1309_s1 + $0x8] sm:$0xff]   ;;  %v1102_v2 = vld [vmem:[%s1309_s1 + $0x10] sm:$0xff]  }
   0x2   :  { %988 = vmatprep.subr.bf16.mxu0 %v1100_v0  ;;  %v1103_v3 = vld [vmem:[%s1309_s1 + $0x18] sm:$0xff]   ;;  %v44_v4 = vld [vmem:[%s1310_s0] sm:$0x3]  ;;  %v45_v5 = vld [vmem:[%s1310_s0 + $0x2] sm:$0x3] }
   0x3   :  { %989 = vmatpush3.bf16.msra.mxu0 %v1100_v0  ;;  %v60_v6 = vunpack.c.l.s8.bf16 %v44_v4  ;;  %v61_v7 = vunpack.c.l.s8.bf16 %v45_v5  ;;  %v1104_v9 = vld [vmem:[%s1309_s1 + $0x20] sm:$0xff]   ;;  %v1109_v11 = vld [vmem:[%s1311_s2 + $0x8] sm:$0xff]   ;;  %v1110_v13 = vld [vmem:[%s1311_s2 + $0x10] sm:$0xff]  }
   0x4   :  { %990 = vmatprep.subr.bf16.mxu0 %v1101_v1  ;;  %v1108_v10 = vld [vmem:[%s1311_s2] sm:$0xff]   ;;  %v1105_v12 = vld [vmem:[%s1309_s1 + $0x28] sm:$0xff]   ;;  %v1106_v14 = vld [vmem:[%s1309_s1 + $0x30] sm:$0xff]  }
   0x5   :  { %v827_v8 = vcombine.low %v60_v6, %v61_v7  ;;  %1020 = vmatprep.subr.bf16.mxu1 %v1108_v10  ;;  %v1111_v15 = vld [vmem:[%s1311_s2 + $0x18] sm:$0xff]   ;;  %v46_v16 = vld [vmem:[%s1310_s0 + $0x4] sm:$0x3]  ;;  %v47_v17 = vld [vmem:[%s1310_s0 + $0x6] sm:$0x3] }
   0x6   :  { %1021 = vmatpush3.bf16.msra.mxu1 %v1108_v10  ;;  %v1107_v18 = vld [vmem:[%s1309_s1 + $0x38] sm:$0xff]   ;;  %v48_v19 = vld [vmem:[%s1310_s0 + $0x8] sm:$0x3]  ;;  %v49_v20 = vld [vmem:[%s1310_s0 + $0xa] sm:$0x3]  ;;  %v62_v21 = vunpack.c.l.s8.bf16 %v46_v16  ;;  %v63_v22 = vunpack.c.l.s8.bf16 %v47_v17 }
   0x7   :  { %991 = vmatpush3.bf16.msra.mxu0 %v1101_v1  ;;  %1004 = vmatprep.mubr.bf16.mxu0 %v827_v8  ;;  %v1112_v23 = vld [vmem:[%s1311_s2 + $0x20] sm:$0xff]   ;;  %v64_v24 = vunpack.c.l.s8.bf16 %v48_v19  ;;  %v65_v25 = vunpack.c.l.s8.bf16 %v49_v20  ;;  %v1113_v27 = vld [vmem:[%s1311_s2 + $0x28] sm:$0xff]   ;;  %v52_v31 = vld [vmem:[%s1310_s0 + $0x10] sm:$0x3] }
   0x8   :  { %992 = vmatprep.subr.bf16.mxu0 %v1102_v2  ;;  %1022 = vmatprep.subr.bf16.mxu1 %v1109_v11  ;;  %v828_v26 = vcombine.low %v62_v21, %v63_v22  ;;  %v50_v29 = vld [vmem:[%s1310_s0 + $0xc] sm:$0x3]  ;;  %v51_v30 = vld [vmem:[%s1310_s0 + $0xe] sm:$0x3]  ;;  %v53_v32 = vld [vmem:[%s1310_s0 + $0x12] sm:$0x3]  ;;  %v68_v36 = vunpack.c.l.s8.bf16 %v52_v31 }
   0x9   :  { %v829_v28 = vcombine.low %v64_v24, %v65_v25  ;;  %v66_v33 = vunpack.c.l.s8.bf16 %v50_v29  ;;  %v67_v34 = vunpack.c.l.s8.bf16 %v51_v30  ;;  %v1114_v35 = vld [vmem:[%s1311_s2 + $0x30] sm:$0xff]   ;;  %v69_v37 = vunpack.c.l.s8.bf16 %v53_v32  ;;  %v56_v42 = vld [vmem:[%s1310_s0 + $0x18] sm:$0x3]  ;;  %v57_v43 = vld [vmem:[%s1310_s0 + $0x1a] sm:$0x3] }
   0xa   :  { %1023 = vmatpush3.bf16.msra.mxu1 %v1109_v11  ;;  %v54_v40 = vld [vmem:[%s1310_s0 + $0x14] sm:$0x3]  ;;  %v55_v41 = vld [vmem:[%s1310_s0 + $0x16] sm:$0x3]  ;;  %v72_v46 = vunpack.c.l.s8.bf16 %v56_v42  ;;  %v73_v47 = vunpack.c.l.s8.bf16 %v57_v43  ;;  %v58_v50 = vld [vmem:[%s1310_s0 + $0x1c] sm:$0x3] }
   0xb   :  { %993 = vmatpush3.bf16.msra.mxu0 %v1102_v2  ;;  %1024 = vmatprep.subr.bf16.mxu1 %v1110_v13  ;;  %v830_v38 = vcombine.low %v66_v33, %v67_v34  ;;  %v831_v39 = vcombine.low %v68_v36, %v69_v37  ;;  %v70_v44 = vunpack.c.l.s8.bf16 %v54_v40  ;;  %v71_v45 = vunpack.c.l.s8.bf16 %v55_v41  ;;  %v59_v51 = vld [vmem:[%s1310_s0 + $0x1e] sm:$0x3]  ;;  %v1116_v56 = vld [vmem:[%s1312_s4] sm:$0xff]   ;;  %v1117_v57 = vld [vmem:[%s1312_s4 + $0x8] sm:$0xff]  }
   0xc   :  { %994 = vmatprep.subr.bf16.mxu0 %v1103_v3  ;;  %v833_v49 = vcombine.low %v72_v46, %v73_v47  ;;  %v74_v52 = vunpack.c.l.s8.bf16 %v58_v50  ;;  %v75_v53 = vunpack.c.l.s8.bf16 %v59_v51  ;;  %v1115_v55 = vld [vmem:[%s1311_s2 + $0x38] sm:$0xff]   ;;  %v1118_v58 = vld [vmem:[%s1312_s4 + $0x10] sm:$0xff]   ;;  %v1120_v60 = vld [vmem:[%s1312_s4 + $0x20] sm:$0xff]  }
   0xd   :  { %v832_v48 = vcombine.low %v70_v44, %v71_v45  ;;  %v1119_v59 = vld [vmem:[%s1312_s4 + $0x18] sm:$0xff]   ;;  %v1121_v61 = vld [vmem:[%s1312_s4 + $0x28] sm:$0xff]   ;;  %v1122_v22 = vld [vmem:[%s1312_s4 + $0x30] sm:$0xff]  }
   0xe   :  { %1025 = vmatpush3.bf16.msra.mxu1 %v1110_v13  ;;  %v834_v54 = vcombine.low %v74_v52, %v75_v53  ;;  %v843_v24 = vld [vmem:[%s1313_s3] ss:$0 sm:$0xff] }
   0xf   :  { %995 = vmatpush3.bf16.msra.mxu0 %v1103_v3  ;;  %1026 = vmatprep.subr.bf16.mxu1 %v1111_v15 }
  0x10   :  { %996 = vmatprep.subr.bf16.mxu0 %v1104_v9 }
  0x12   :  { %1027 = vmatpush3.bf16.msra.mxu1 %v1111_v15 }
  0x13   :  { %997 = vmatpush3.bf16.msra.mxu0 %v1104_v9  ;;  %1028 = vmatprep.subr.bf16.mxu1 %v1112_v23 }
  0x14   :  { %998 = vmatprep.subr.bf16.mxu0 %v1105_v12 }
  0x16   :  { %1029 = vmatpush3.bf16.msra.mxu1 %v1112_v23  ;;  %v1123_v23 = vld [vmem:[%s1312_s4 + $0x38] sm:$0xff]  }
  0x17   :  { %999 = vmatpush3.bf16.msra.mxu0 %v1105_v12  ;;  %1030 = vmatprep.subr.bf16.mxu1 %v1113_v27 }
  0x18   :  { %1000 = vmatprep.subr.bf16.mxu0 %v1106_v14 }
  0x1a   :  { %1031 = vmatpush3.bf16.msra.mxu1 %v1113_v27 }
  0x1b   :  { %1001 = vmatpush3.bf16.msra.mxu0 %v1106_v14  ;;  %1032 = vmatprep.subr.bf16.mxu1 %v1114_v35 }
  0x1c   :  { %1002 = vmatprep.subr.bf16.mxu0 %v1107_v18 }
  0x1e   :  { %1033 = vmatpush3.bf16.msra.mxu1 %v1114_v35 }
  0x1f   :  { %1003 = vmatpush3.bf16.msra.mxu0 %v1107_v18  ;;  %1034 = vmatprep.subr.bf16.mxu1 %v1115_v55 }
  0x20   :  { %1052 = vmatprep.subr.bf16.mxu0 %v1116_v56 }
  0x22   :  { %1005 = vmatmul.mubr.bf16.vlgmr.msra.gmra.mrb[0].mxu0 %v828_v26  ;;  %1035 = vmatpush3.bf16.msra.mxu1 %v1115_v55 }
  0x23   :  { %1008 = vmatprep.mubr.bf16.mxu0 %v829_v28  ;;  %1084 = vmatprep.subr.bf16.mxu1 %v1116_v56 }
  0x24   :  { %1053 = vmatpush3.bf16.msra.mxu0 %v1116_v56 }
  0x25   :  { %1054 = vmatprep.subr.bf16.mxu0 %v1117_v57 }
  0x28   :  { %1055 = vmatpush3.bf16.msra.mxu0 %v1117_v57 }
  0x29   :  { %1056 = vmatprep.subr.bf16.mxu0 %v1118_v58 }
  0x2a   :  { %1009 = vmatmul.mubr.bf16.gmra.mrb[4].mxu0 %v830_v38 }
  0x2b   :  { %1012 = vmatprep.mubr.bf16.mxu0 %v831_v39 }
  0x2c   :  { %1057 = vmatpush3.bf16.msra.mxu0 %v1118_v58 }
  0x2d   :  { %1058 = vmatprep.subr.bf16.mxu0 %v1119_v59 }
  0x30   :  { %1059 = vmatpush3.bf16.msra.mxu0 %v1119_v59 }
  0x31   :  { %1060 = vmatprep.subr.bf16.mxu0 %v1120_v60 }
  0x32   :  { %1013 = vmatmul.mubr.bf16.gmra.mrb[8].mxu0 %v832_v48 }
  0x33   :  { %1016 = vmatprep.mubr.bf16.mxu0 %v833_v49 }
  0x34   :  { %1061 = vmatpush3.bf16.msra.mxu0 %v1120_v60 }
  0x35   :  { %1062 = vmatprep.subr.bf16.mxu0 %v1121_v61 }
  0x38   :  { %1063 = vmatpush3.bf16.msra.mxu0 %v1121_v61 }
  0x39   :  { %1064 = vmatprep.subr.bf16.mxu0 %v1122_v22 }
  0x3a   :  { %1017 = vmatmul.mubr.bf16.gmra.mrb[12].mxu0 %v834_v54 }
  0x3c   :  { %1065 = vmatpush3.bf16.msra.mxu0 %v1122_v22 }
  0x3d   :  { %1066 = vmatprep.subr.bf16.mxu0 %v1123_v23 }
  0x40   :  { %1067 = vmatpush3.bf16.msra.mxu0 %v1123_v23 }
  0xf5   :  { %v1006_v62 = vpop.f32.mrb[0].mxu0 }
  0xf6   :  { %v243_v63 = vpop.f32.mrb[1].mxu0 }
  0xf7   :  { %v1007_v0 = vpop.f32.mrb[2].mxu0 }
  0xf8   :  { %v358_v1 = vpack.c.bf16 %v1007_v0, %v1006_v62  ;;  %v246_v2 = vpop.f32.mrb[3].mxu0 }
  0xf9   :  { %v357_v3 = vpack.c.bf16 %v246_v2, %v243_v63 }
  0xfb   :  { %1036 = vmatprep.mubr.bf16.mxu1 %v357_v3 }
  0xfc   :  { %1037 = vmatmul.mubr.bf16.vlgmr.msra.gmra.mrb[0].mxu1 %v358_v1 }
  0xfd   :  { %v1010_v4 = vpop.f32.mrb[4].mxu0  ;;  %1092 = vmatpush3.bf16.msra.mxu1 %v1116_v56 }
  0xfe   :  { %v259_v5 = vpop.f32.mrb[5].mxu0  ;;  %1085 = vmatprep.subr.bf16.mxu1 %v1117_v57 }
  0xff   :  { %v1011_v6 = vpop.f32.mrb[6].mxu0 }
 0x100   :  { %v360_v7 = vpack.c.bf16 %v1011_v6, %v1010_v4  ;;  %v262_v8 = vpop.f32.mrb[7].mxu0 }
 0x101   :  { %v359_v9 = vpack.c.bf16 %v262_v8, %v259_v5  ;;  %1093 = vmatpush3.bf16.msra.mxu1 %v1117_v57 }
 0x102   :  { %1086 = vmatprep.subr.bf16.mxu1 %v1118_v58 }
 0x103   :  { %1040 = vmatprep.mubr.bf16.mxu1 %v359_v9 }
 0x104   :  { %1041 = vmatmul.mubr.bf16.gmra.mrb[4].mxu1 %v360_v7 }
 0x105   :  { %v1014_v10 = vpop.f32.mrb[8].mxu0  ;;  %1094 = vmatpush3.bf16.msra.mxu1 %v1118_v58 }
 0x106   :  { %v275_v11 = vpop.f32.mrb[9].mxu0  ;;  %1087 = vmatprep.subr.bf16.mxu1 %v1119_v59 }
 0x107   :  { %v1015_v12 = vpop.f32.mrb[10].mxu0 }
 0x108   :  { %v362_v13 = vpack.c.bf16 %v1015_v12, %v1014_v10  ;;  %v278_v14 = vpop.f32.mrb[11].mxu0 }
 0x109   :  { %v361_v15 = vpack.c.bf16 %v278_v14, %v275_v11  ;;  %1095 = vmatpush3.bf16.msra.mxu1 %v1119_v59 }
 0x10a   :  { %1088 = vmatprep.subr.bf16.mxu1 %v1120_v60 }
 0x10b   :  { %1044 = vmatprep.mubr.bf16.mxu1 %v361_v15 }
 0x10c   :  { %1045 = vmatmul.mubr.bf16.gmra.mrb[8].mxu1 %v362_v13 }
 0x10d   :  { %v1018_v16 = vpop.f32.mrb[12].mxu0  ;;  %1096 = vmatpush3.bf16.msra.mxu1 %v1120_v60 }
 0x10e   :  { %v291_v17 = vpop.f32.mrb[13].mxu0  ;;  %1089 = vmatprep.subr.bf16.mxu1 %v1121_v61 }
 0x10f   :  { %v1019_v18 = vpop.f32.mrb[14].mxu0 }
 0x110   :  { %v364_v19 = vpack.c.bf16 %v1019_v18, %v1018_v16  ;;  %v294_v20 = vpop.f32.mrb[15].mxu0 }
 0x111   :  { %v363_v21 = vpack.c.bf16 %v294_v20, %v291_v17  ;;  %1097 = vmatpush3.bf16.msra.mxu1 %v1121_v61  ;;  %v852_v17 = vld [vmem:[%s1314_s5] ss:$0 sm:$0xff] }
 0x112   :  { %1090 = vmatprep.subr.bf16.mxu1 %v1122_v22 }
 0x113   :  { %1048 = vmatprep.mubr.bf16.mxu1 %v363_v21 }
 0x114   :  { %1049 = vmatmul.mubr.bf16.gmra.mrb[12].mxu1 %v364_v19 }
 0x115   :  { %1098 = vmatpush3.bf16.msra.mxu1 %v1122_v22 }
 0x116   :  { %1091 = vmatprep.subr.bf16.mxu1 %v1123_v23 }
 0x119   :  { %1099 = vmatpush3.bf16.msra.mxu1 %v1123_v23 }
 0x1cf   :  { %v1038_v25 = vpop.f32.mrb[0].mxu1 }
 0x1d0   :  { %v479_v26 = vadd.f32 %v1038_v25, %v843_v24  ;;  %v470_v27 = vpop.f32.mrb[1].mxu1 }
 0x1d1   :  { %v471_v28 = vadd.f32 %v843_v24, %v470_v27  ;;  %v1039_v29 = vpop.f32.mrb[2].mxu1 }
 0x1d2   :  { %v482_v30 = vadd.f32 %v1039_v29, %v843_v24  ;;  %v473_v31 = vpop.f32.mrb[3].mxu1  ;;  %v535_v33 = vmax.f32 %v479_v26, 0.0 }
 0x1d3   :  { %v474_v32 = vadd.f32 %v843_v24, %v473_v31  ;;  %v533_v35 = vmax.f32 %v471_v28, 0.0 }
 0x1d4   :  { %v536_v34 = vmax.f32 %v482_v30, 0.0 }
 0x1d5   :  { %v534_v36 = vmax.f32 %v474_v32, 0.0 }
 0x1d6   :  { %v550_v37 = vpack.c.bf16 %v536_v34, %v535_v33 }
 0x1d7   :  { %v549_v38 = vpack.c.bf16 %v534_v36, %v533_v35  ;;  %v1042_v39 = vpop.f32.mrb[4].mxu1 }
 0x1d8   :  { %v495_v40 = vadd.f32 %v1042_v39, %v843_v24  ;;  %v486_v41 = vpop.f32.mrb[5].mxu1 }
 0x1d9   :  { %v487_v42 = vadd.f32 %v843_v24, %v486_v41  ;;  %v1043_v43 = vpop.f32.mrb[6].mxu1  ;;  %1068 = vmatprep.mubr.bf16.mxu0 %v549_v38 }
 0x1da   :  { %v498_v44 = vadd.f32 %v1043_v43, %v843_v24  ;;  %v489_v45 = vpop.f32.mrb[7].mxu1  ;;  %1069 = vmatmul.mubr.bf16.vlgmr.msra.gmra.mrb[16].mxu0 %v550_v37  ;;  %v539_v47 = vmax.f32 %v495_v40, 0.0 }
 0x1db   :  { %v490_v46 = vadd.f32 %v843_v24, %v489_v45  ;;  %v537_v49 = vmax.f32 %v487_v42, 0.0 }
 0x1dc   :  { %v540_v48 = vmax.f32 %v498_v44, 0.0 }
 0x1dd   :  { %v538_v50 = vmax.f32 %v490_v46, 0.0 }
 0x1de   :  { %v552_v51 = vpack.c.bf16 %v540_v48, %v539_v47 }
 0x1df   :  { %v551_v52 = vpack.c.bf16 %v538_v50, %v537_v49  ;;  %v1046_v53 = vpop.f32.mrb[8].mxu1 }
 0x1e0   :  { %v511_v54 = vadd.f32 %v1046_v53, %v843_v24  ;;  %v502_v55 = vpop.f32.mrb[9].mxu1 }
 0x1e1   :  { %v503_v56 = vadd.f32 %v843_v24, %v502_v55  ;;  %v1047_v57 = vpop.f32.mrb[10].mxu1  ;;  %1072 = vmatprep.mubr.bf16.mxu0 %v551_v52 }
 0x1e2   :  { %v514_v58 = vadd.f32 %v1047_v57, %v843_v24  ;;  %v505_v59 = vpop.f32.mrb[11].mxu1  ;;  %1073 = vmatmul.mubr.bf16.gmra.mrb[20].mxu0 %v552_v51  ;;  %v543_v61 = vmax.f32 %v511_v54, 0.0 }
 0x1e3   :  { %v506_v60 = vadd.f32 %v843_v24, %v505_v59  ;;  %v541_v63 = vmax.f32 %v503_v56, 0.0 }
 0x1e4   :  { %v544_v62 = vmax.f32 %v514_v58, 0.0 }
 0x1e5   :  { %v542_v0 = vmax.f32 %v506_v60, 0.0 }
 0x1e6   :  { %v554_v1 = vpack.c.bf16 %v544_v62, %v543_v61 }
 0x1e7   :  { %v553_v2 = vpack.c.bf16 %v542_v0, %v541_v63  ;;  %v1050_v3 = vpop.f32.mrb[12].mxu1 }
 0x1e8   :  { %v527_v4 = vadd.f32 %v1050_v3, %v843_v24  ;;  %v518_v5 = vpop.f32.mrb[13].mxu1 }
 0x1e9   :  { %v519_v6 = vadd.f32 %v843_v24, %v518_v5  ;;  %v1051_v7 = vpop.f32.mrb[14].mxu1  ;;  %1076 = vmatprep.mubr.bf16.mxu1 %v553_v2 }
 0x1ea   :  { %v530_v8 = vadd.f32 %v1051_v7, %v843_v24  ;;  %v521_v9 = vpop.f32.mrb[15].mxu1  ;;  %1077 = vmatmul.mubr.bf16.vlgmr.msra.gmra.mrb[16].mxu1 %v554_v1  ;;  %v547_v11 = vmax.f32 %v527_v4, 0.0 }
 0x1eb   :  { %v522_v10 = vadd.f32 %v843_v24, %v521_v9  ;;  %v545_v13 = vmax.f32 %v519_v6, 0.0 }
 0x1ec   :  { %v548_v12 = vmax.f32 %v530_v8, 0.0 }
 0x1ed   :  { %v546_v14 = vmax.f32 %v522_v10, 0.0 }
 0x1ee   :  { %v556_v15 = vpack.c.bf16 %v548_v12, %v547_v11 }
 0x1ef   :  { %v555_v16 = vpack.c.bf16 %v546_v14, %v545_v13 }
 0x1f1   :  { %1080 = vmatprep.mubr.bf16.mxu1 %v555_v16 }
 0x1f2   :  { %1081 = vmatmul.mubr.bf16.gmra.mrb[20].mxu1 %v556_v15 }
 0x2ad   :  { %v1070_v18 = vpop.f32.mrb[16].mxu0 }
 0x2ae   :  { %v671_v19 = vadd.f32 %v1070_v18, %v852_v17  ;;  %v662_v20 = vpop.f32.mrb[17].mxu0 }
 0x2af   :  { %v663_v21 = vadd.f32 %v852_v17, %v662_v20  ;;  %v1071_v22 = vpop.f32.mrb[18].mxu0 }
 0x2b0   :  { %v674_v23 = vadd.f32 %v1071_v22, %v852_v17  ;;  %v665_v25 = vpop.f32.mrb[19].mxu0  ;;  %v727_v26 = vmax.f32 %v671_v19, 0.0 }
 0x2b1   :  { %v666_v24 = vadd.f32 %v852_v17, %v665_v25  ;;  %v725_v28 = vmax.f32 %v663_v21, 0.0 }
 0x2b2   :  { %v728_v27 = vmax.f32 %v674_v23, 0.0 }
 0x2b3   :  { %v726_v29 = vmax.f32 %v666_v24, 0.0 }
 0x2b4   :  { %v901_v30 = vpack.c.bf16 %v728_v27, %v727_v26 }
 0x2b5   :  { %v896_v31 = vpack.c.bf16 %v726_v29, %v725_v28  ;;  %v1074_v32 = vpop.f32.mrb[20].mxu0 }
 0x2b6   :  { %933 = vst [vmem:[%s1315_s6 + $0x8] sm:$0xff] %v901_v30   ;;  %v687_v33 = vadd.f32 %v1074_v32, %v852_v17  ;;  %v678_v34 = vpop.f32.mrb[21].mxu0 }
 0x2b7   :  { %897 = vst [vmem:[%s1315_s6] sm:$0xff] %v896_v31   ;;  %v679_v35 = vadd.f32 %v852_v17, %v678_v34  ;;  %v1075_v36 = vpop.f32.mrb[22].mxu0 }
 0x2b8   :  { %v690_v37 = vadd.f32 %v1075_v36, %v852_v17  ;;  %v681_v38 = vpop.f32.mrb[23].mxu0  ;;  %v731_v40 = vmax.f32 %v687_v33, 0.0 }
 0x2b9   :  { %v682_v39 = vadd.f32 %v852_v17, %v681_v38  ;;  %v729_v42 = vmax.f32 %v679_v35, 0.0 }
 0x2ba   :  { %v732_v41 = vmax.f32 %v690_v37, 0.0 }
 0x2bb   :  { %v730_v43 = vmax.f32 %v682_v39, 0.0 }
 0x2bc   :  { %v911_v44 = vpack.c.bf16 %v732_v41, %v731_v40 }
 0x2bd   :  { %v906_v45 = vpack.c.bf16 %v730_v43, %v729_v42  ;;  %v1078_v46 = vpop.f32.mrb[16].mxu1 }
 0x2be   :  { %935 = vst [vmem:[%s1315_s6 + $0x18] sm:$0xff] %v911_v44   ;;  %v703_v47 = vadd.f32 %v1078_v46, %v852_v17  ;;  %v694_v48 = vpop.f32.mrb[17].mxu1 }
 0x2bf   :  { %934 = vst [vmem:[%s1315_s6 + $0x10] sm:$0xff] %v906_v45   ;;  %v695_v49 = vadd.f32 %v852_v17, %v694_v48  ;;  %v1079_v50 = vpop.f32.mrb[18].mxu1 }
 0x2c0   :  { %v706_v51 = vadd.f32 %v1079_v50, %v852_v17  ;;  %v697_v52 = vpop.f32.mrb[19].mxu1  ;;  %v735_v54 = vmax.f32 %v703_v47, 0.0 }
 0x2c1   :  { %v698_v53 = vadd.f32 %v852_v17, %v697_v52  ;;  %v733_v56 = vmax.f32 %v695_v49, 0.0 }
 0x2c2   :  { %v736_v55 = vmax.f32 %v706_v51, 0.0 }
 0x2c3   :  { %v734_v57 = vmax.f32 %v698_v53, 0.0 }
 0x2c4   :  { %v921_v58 = vpack.c.bf16 %v736_v55, %v735_v54 }
 0x2c5   :  { %v916_v59 = vpack.c.bf16 %v734_v57, %v733_v56  ;;  %v1082_v60 = vpop.f32.mrb[20].mxu1 }
 0x2c6   :  { %937 = vst [vmem:[%s1315_s6 + $0x28] sm:$0xff] %v921_v58   ;;  %v719_v61 = vadd.f32 %v1082_v60, %v852_v17  ;;  %v710_v62 = vpop.f32.mrb[21].mxu1 }
 0x2c7   :  { %936 = vst [vmem:[%s1315_s6 + $0x20] sm:$0xff] %v916_v59   ;;  %v711_v63 = vadd.f32 %v852_v17, %v710_v62  ;;  %v1083_v0 = vpop.f32.mrb[22].mxu1 }
 0x2c8   :  { %v722_v1 = vadd.f32 %v1083_v0, %v852_v17  ;;  %v713_v2 = vpop.f32.mrb[23].mxu1  ;;  %v739_v4 = vmax.f32 %v719_v61, 0.0 }
 0x2c9   :  { %v714_v3 = vadd.f32 %v852_v17, %v713_v2  ;;  %v737_v6 = vmax.f32 %v711_v63, 0.0 }
 0x2ca   :  { %v740_v5 = vmax.f32 %v722_v1, 0.0 }
 0x2cb   :  { %v738_v7 = vmax.f32 %v714_v3, 0.0 }
 0x2cc   :  { %v931_v8 = vpack.c.bf16 %v740_v5, %v739_v4 }
 0x2cd   :  { %v926_v9 = vpack.c.bf16 %v738_v7, %v737_v6 }
 0x2ce   :  { %939 = vst [vmem:[%s1315_s6 + $0x38] sm:$0xff] %v931_v8  }
 0x2cf   :  { %938 = vst [vmem:[%s1315_s6 + $0x30] sm:$0xff] %v926_v9  }

</bundles_post_ra>
